<compile_context>
chip_gen: v6e
topology: v6e:2x2x1
jax: 0.10.0
libtpu: 0.0.40
codegen_flags: <defaults>
</compile_context>

<pallas_src>
import functools

import jax
import jax.numpy as jnp
from jax import lax
from jax.experimental import pallas as pl
from jax.experimental.pallas import tpu as pltpu

L = 9            # sequence length implied by fc1 in_features = 16 * 9
C1 = 8           # conv1 out channels
C2 = 16          # conv2 out channels
H = 128          # fc1 out features
KS = 3           # conv kernel size
K_AUG = L + 1    # x gets a ones column -> conv/fc1 biases fold into the matmul


def _round_up(n, m):
    return ((n + m - 1) // m) * m


# ----------------------------------------------------------------------------
# Kernel: one batch tile per grid step; inner loop over vreg-resident sub-chunks.
# ----------------------------------------------------------------------------
def cnn_kernel(x_ref, w_ref, v_ref, wfc2_ref, bfc2_ref, out_ref, *, chunk):
    """Per sub-chunk (kept in vregs, no VMEM round-trip of the intermediate):
         h   = [x,1] @ W_aug          (CH,10)@(10,128)  MXU, f32 acc, biases folded
         lin = [x,1] @ v              (CH,10)@(10,1)    = 0.1 * (h @ wfc2), pre-folded
         y   = relu(h) @ (0.9*wfc2) + lin + bfc2        == LeakyReLU(0.1)(h) @ wfc2 + bfc2
    """
    n_chunks = x_ref.shape[0] // chunk

    def body(c, carry):
        base = pl.multiple_of(c * chunk, chunk)
        xc = x_ref[pl.ds(base, chunk), :]                                    # (CH, 10)
        h = jnp.dot(xc, w_ref[...], preferred_element_type=jnp.float32)     # (CH, 128)
        lin = jnp.dot(xc, v_ref[...], preferred_element_type=jnp.float32)   # (CH, 1)
        # Only VALU work on the (CH,128) tensor: one cast (to epilogue dtype) + one max.
        r = jnp.maximum(h.astype(wfc2_ref.dtype), 0.0)
        y = (jnp.dot(r, wfc2_ref[...], preferred_element_type=jnp.float32)  # (CH, 1)
             + lin + bfc2_ref[...])
        out_ref[pl.ds(base, chunk), :] = y.astype(out_ref.dtype)
        return carry

    lax.fori_loop(0, n_chunks, body, 0, unroll=(n_chunks <= 16))


# ----------------------------------------------------------------------------
# Wrapper-side weight prep: fold conv1 -> conv2 -> fc1 (and their biases) into
# one augmented weight  W_aug (10, 128)  acting on [x, 1].
# ----------------------------------------------------------------------------
def _affine_collapse(p):
    dn = ("NCH", "OIH", "NCH")

    def conv_fc1(xb, with_bias):
        o1 = lax.conv_general_dilated(xb, p["w1"], (1,), ((1, 1),),
                                      dimension_numbers=dn)
        if with_bias:
            o1 = o1 + p["b1"][None, :, None]
        o2 = lax.conv_general_dilated(o1, p["w2"], (1,), ((1, 1),),
                                      dimension_numbers=dn)
        if with_bias:
            o2 = o2 + p["b2"][None, :, None]
        flat = o2.reshape(xb.shape[0], -1)            # PyTorch channel-major flatten
        h = flat @ p["wfc1"].T
        if with_bias:
            h = h + p["bfc1"]
        return h

    # Linear part: push the 9x9 identity basis through with biases off.
    w_eff = conv_fc1(jnp.eye(L, dtype=jnp.float32)[:, None, :], with_bias=False)  # (9, 128)
    # Affine offset: the map evaluated at zero with biases on.
    b_eff = conv_fc1(jnp.zeros((1, 1, L), jnp.float32), with_bias=True)           # (1, 128)
    return jnp.concatenate([w_eff, b_eff], axis=0)                                # (10, 128)


def _tiling(batch, block_b, chunk):
    """Pick (TB, CH, Bp): TB multiple of CH (multiple of 8); >=2 grid steps when
    the batch allows so the 'parallel' axis can span v7x's two TensorCores."""
    bp8 = _round_up(batch, 8)
    if bp8 <= chunk:
        return bp8, bp8, bp8                          # single tile, single chunk
    tb = _round_up(min(block_b, bp8), chunk)
    tb = max(chunk, min(tb, _round_up(-(-bp8 // 2), chunk)))   # keep >= 2 grid steps
    bp = _round_up(batch, tb)
    return tb, chunk, bp


def cnn_forward(x, p, *, block_b=2048, chunk=256,
                compute_dtype=jnp.bfloat16, epilogue_dtype=None):
    """x: (B, 1, 9) float32 (PyTorch NCL). Returns (B, 1) float32.

    compute_dtype : dtype of x / fused-weight MXU operands.  bf16 (default) is
                    MXU-native on v5e/v6e/v7x and halves HBM + lane-padded VMEM
                    traffic; accumulation stays f32.  Use jnp.float32 for exact checks.
    epilogue_dtype: dtype of the relu/fc2 stage.  Defaults to compute_dtype
                    (bf16 VPU on v6e/v7x); pass jnp.float32 on v5e (no bf16 VPU).
    block_b       : batch rows per grid step (tile); 2048 amortizes the ~0.35 us
                    per-step overhead while staying far under scoped-VMEM limits.
    chunk         : rows per inner vreg-resident sub-chunk (multiple of 8).
    """
    if epilogue_dtype is None:
        epilogue_dtype = compute_dtype
    assert chunk % 8 == 0
    B = x.shape[0]
    assert x.shape == (B, 1, L)

    # Fused weights (all in f32, cast just before the call).
    w_aug = _affine_collapse(p)                        # (10, 128), conv/fc1 biases folded
    wfc2 = jnp.transpose(p["wfc2"], (1, 0))            # (128, 1)
    v = 0.1 * (w_aug @ wfc2)                           # (10, 1)  linear LeakyReLU term
    wfc2_s = 0.9 * wfc2                                # (128, 1) relu-branch fc2 weight
    bfc2 = p["bfc2"].reshape(1, 1).astype(jnp.float32)

    TB, CH, Bp = _tiling(B, block_b, chunk)

    x2 = x.reshape(B, L)                               # squeeze the single channel
    if Bp != B:
        x2 = jnp.pad(x2, ((0, Bp - B), (0, 0)))
    x_aug = jnp.concatenate([x2, jnp.ones((Bp, 1), x2.dtype)], axis=1)   # (Bp, 10)

    x_aug = x_aug.astype(compute_dtype)
    w_aug = w_aug.astype(compute_dtype)
    v = v.astype(compute_dtype)
    wfc2_s = wfc2_s.astype(epilogue_dtype)

    kernel = functools.partial(cnn_kernel, chunk=CH)
    out = pl.pallas_call(
        kernel,
        out_shape=jax.ShapeDtypeStruct((Bp, 1), jnp.float32),
        grid=(Bp // TB,),
        in_specs=[
            pl.BlockSpec((TB, K_AUG), lambda i: (i, 0)),   # x tile (double-buffered)
            pl.BlockSpec((K_AUG, H), lambda i: (0, 0)),    # W_aug (constant block)
            pl.BlockSpec((K_AUG, 1), lambda i: (0, 0)),    # v = 0.1 * W_aug @ wfc2
            pl.BlockSpec((H, 1), lambda i: (0, 0)),        # 0.9 * fc2 weight
            pl.BlockSpec((1, 1), lambda i: (0, 0)),        # fc2 bias
        ],
        out_specs=pl.BlockSpec((TB, 1), lambda i: (i, 0)),
        compiler_params=pltpu.CompilerParams(
            dimension_semantics=("parallel",)),            # megacore on v7x
    )(x_aug, w_aug, v, wfc2_s, bfc2)

    return out[:B]


# ----------------------------------------------------------------------------
# Params + pure-JAX reference (mirrors the PyTorch module exactly).
# ----------------------------------------------------------------------------
def init_params(key):
    ks = jax.random.split(key, 8)
    return {
        "w1":   jax.random.normal(ks[0], (C1, 1, KS), jnp.float32) * 0.3,   # conv1.weight
        "b1":   jax.random.normal(ks[1], (C1,),       jnp.float32) * 0.1,   # conv1.bias
        "w2":   jax.random.normal(ks[2], (C2, C1, KS), jnp.float32) * 0.2,  # conv2.weight
        "b2":   jax.random.normal(ks[3], (C2,),        jnp.float32) * 0.1,  # conv2.bias
        "wfc1": jax.random.normal(ks[4], (H, C2 * L),  jnp.float32) * 0.1,  # fc1.weight
        "bfc1": jax.random.normal(ks[5], (H,),         jnp.float32) * 0.1,  # fc1.bias
        "wfc2": jax.random.normal(ks[6], (1, H),       jnp.float32) * 0.1,  # fc2.weight
        "bfc2": jax.random.normal(ks[7], (1,),         jnp.float32) * 0.1,  # fc2.bias
    }


def reference_forward(x, p):
    dn = ("NCH", "OIH", "NCH")
    o1 = lax.conv_general_dilated(x, p["w1"], (1,), ((1, 1),),
                                  dimension_numbers=dn) + p["b1"][None, :, None]
    o2 = lax.conv_general_dilated(o1, p["w2"], (1,), ((1, 1),),
                                  dimension_numbers=dn) + p["b2"][None, :, None]
    flat = o2.reshape(x.shape[0], -1)                    # torch.flatten(out, 1)
    h = flat @ p["wfc1"].T + p["bfc1"]
    h = jnp.where(h > 0.0, h, 0.1 * h)                   # LeakyReLU(0.1)
    # TODO(synk): nn.Dropout(p=0.3) is identity at inference; no stochastic drop here.
    return h @ p["wfc2"].T + p["bfc2"]


if __name__ == "__main__":
    key = jax.random.PRNGKey(0)
    kx, kp, kx2 = jax.random.split(key, 3)
    params = init_params(kp)

    # Small batch, f32 compute path (near-exact check of the fused algebra).
    B = 4
    x = jax.random.normal(kx, (B, 1, L), jnp.float32)
    ref = reference_forward(x, params)

    fwd_f32 = jax.jit(functools.partial(cnn_forward, compute_dtype=jnp.float32))
    out = jax.block_until_ready(fwd_f32(x, params))
    assert out.shape == (B, 1)
    assert jnp.allclose(out, ref, rtol=1e-3, atol=1e-3), (out, ref)

    # Default bf16 MXU-operand path (f32 accumulation), same small batch.
    fwd_bf16 = jax.jit(cnn_forward)
    out_bf = jax.block_until_ready(fwd_bf16(x, params))
    assert out_bf.shape == (B, 1)
    assert jnp.allclose(out_bf, ref, rtol=5e-2, atol=5e-2), (out_bf, ref)

    # Larger batch exercising the multi-tile grid + in-kernel sub-chunk loop
    # (f32 path so the tiling/padding logic is checked with a tight tolerance).
    B2 = 600
    x_big = jax.random.normal(kx2, (B2, 1, L), jnp.float32)
    ref2 = reference_forward(x_big, params)
    out2 = jax.block_until_ready(fwd_f32(x_big, params))
    assert out2.shape == (B2, 1)
    assert jnp.allclose(out2, ref2, rtol=1e-3, atol=1e-3)

    print("KERNEL_OK")
</pallas_src>

<mosaic_0001>
module attributes {stable_mosaic.version = 11 : i64} {
  func.func @cnn_kernel(%arg0: i32, %arg1: memref<8x10xf32, #tpu.memory_space<vmem>>, %arg2: memref<10x128xf32, #tpu.memory_space<vmem>>, %arg3: memref<10x1xf32, #tpu.memory_space<vmem>>, %arg4: memref<128x1xf32, #tpu.memory_space<vmem>>, %arg5: memref<1x1xf32, #tpu.memory_space<vmem>>, %arg6: memref<8x1xf32, #tpu.memory_space<vmem>>) attributes {dimension_semantics = [#tpu.dimension_semantics<parallel>], iteration_bounds = array<i64: 1>, scalar_prefetch = 0 : i64, scratch_operands = 0 : i64, tpu.core_type = #tpu.core_type<tc>, window_params = [{transform_indices = @transform_0, window_bounds = array<i64: 8, 10>}, {pipeline_mode = #tpu.pipeline_mode<synchronous>, transform_indices = @transform_1, window_bounds = array<i64: 10, 128>}, {pipeline_mode = #tpu.pipeline_mode<synchronous>, transform_indices = @transform_2, window_bounds = array<i64: 10, 1>}, {pipeline_mode = #tpu.pipeline_mode<synchronous>, transform_indices = @transform_3, window_bounds = array<i64: 128, 1>}, {pipeline_mode = #tpu.pipeline_mode<synchronous>, transform_indices = @transform_4, window_bounds = array<i64: 1, 1>}, {transform_indices = @transform_5, window_bounds = array<i64: 8, 1>}]} {
    %c0_i32 = arith.constant 0 : i32
    %c8_i32 = arith.constant 8 : i32
    %0 = arith.muli %c0_i32, %c8_i32 : i32
    %1 = tpu.assume_multiple %0, 8 : i32
    %2 = arith.index_cast %1 : i32 to index
    %c0 = arith.constant 0 : index
    %3 = vector.load %arg1[%2, %c0] : memref<8x10xf32, #tpu.memory_space<vmem>>, vector<8x10xf32>
    %c0_0 = arith.constant 0 : index
    %c0_1 = arith.constant 0 : index
    %4 = vector.load %arg2[%c0_0, %c0_1] : memref<10x128xf32, #tpu.memory_space<vmem>>, vector<10x128xf32>
    %cst = arith.constant dense<0.000000e+00> : vector<8x128xf32>
    %5 = tpu.matmul %3, %4, %cst {dimension_numbers = #tpu.dot_dimension_numbers<[1], [0], [0], [1], [0, 0, 1, 1], [], []>} : vector<8x10xf32>, vector<10x128xf32>, vector<8x128xf32> -> vector<8x128xf32>
    %c0_2 = arith.constant 0 : index
    %c0_3 = arith.constant 0 : index
    %6 = vector.load %arg3[%c0_2, %c0_3] : memref<10x1xf32, #tpu.memory_space<vmem>>, vector<10x1xf32>
    %cst_4 = arith.constant dense<0.000000e+00> : vector<8x1xf32>
    %7 = tpu.matmul %3, %6, %cst_4 {dimension_numbers = #tpu.dot_dimension_numbers<[1], [0], [0], [1], [0, 0, 1, 1], [], []>} : vector<8x10xf32>, vector<10x1xf32>, vector<8x1xf32> -> vector<8x1xf32>
    %cst_5 = arith.constant 0.000000e+00 : f32
    %8 = vector.broadcast %cst_5 : f32 to vector<8x128xf32>
    %9 = arith.maximumf %5, %8 : vector<8x128xf32>
    %c0_6 = arith.constant 0 : index
    %c0_7 = arith.constant 0 : index
    %10 = vector.load %arg4[%c0_6, %c0_7] : memref<128x1xf32, #tpu.memory_space<vmem>>, vector<128x1xf32>
    %cst_8 = arith.constant dense<0.000000e+00> : vector<8x1xf32>
    %11 = tpu.matmul %9, %10, %cst_8 {dimension_numbers = #tpu.dot_dimension_numbers<[1], [0], [0], [1], [0, 0, 1, 1], [], []>} : vector<8x128xf32>, vector<128x1xf32>, vector<8x1xf32> -> vector<8x1xf32>
    %12 = arith.addf %11, %7 : vector<8x1xf32>
    %c0_9 = arith.constant 0 : index
    %c0_10 = arith.constant 0 : index
    %13 = vector.load %arg5[%c0_9, %c0_10] : memref<1x1xf32, #tpu.memory_space<vmem>>, vector<1x1xf32>
    %14 = vector.broadcast %13 : vector<1x1xf32> to vector<8x1xf32>
    %15 = arith.addf %12, %14 : vector<8x1xf32>
    %16 = arith.index_cast %1 : i32 to index
    %c0_11 = arith.constant 0 : index
    %17 = vector.load %arg6[%16, %c0_11] : memref<8x1xf32, #tpu.memory_space<vmem>>, vector<8x1xf32>
    tpu.vector_store %arg6[%16, %c0_11], %15 {strides = array<i32>} : memref<8x1xf32, #tpu.memory_space<vmem>>, vector<8x1xf32>,
    %c1_i32 = arith.constant 1 : i32
    return
  }
  func.func @transform_0(%arg0: i32) -> (i32, i32) {
    %c0_i32 = arith.constant 0 : i32
    %c0_i32_0 = arith.constant 0 : i32
    return %arg0, %c0_i32 : i32, i32
  }
  func.func @transform_1(%arg0: i32) -> (i32, i32) {
    %c0_i32 = arith.constant 0 : i32
    %c0_i32_0 = arith.constant 0 : i32
    %c0_i32_1 = arith.constant 0 : i32
    return %c0_i32, %c0_i32_0 : i32, i32
  }
  func.func @transform_2(%arg0: i32) -> (i32, i32) {
    %c0_i32 = arith.constant 0 : i32
    %c0_i32_0 = arith.constant 0 : i32
    %c0_i32_1 = arith.constant 0 : i32
    return %c0_i32, %c0_i32_0 : i32, i32
  }
  func.func @transform_3(%arg0: i32) -> (i32, i32) {
    %c0_i32 = arith.constant 0 : i32
    %c0_i32_0 = arith.constant 0 : i32
    %c0_i32_1 = arith.constant 0 : i32
    return %c0_i32, %c0_i32_0 : i32, i32
  }
  func.func @transform_4(%arg0: i32) -> (i32, i32) {
    %c0_i32 = arith.constant 0 : i32
    %c0_i32_0 = arith.constant 0 : i32
    %c0_i32_1 = arith.constant 0 : i32
    return %c0_i32, %c0_i32_0 : i32, i32
  }
  func.func @transform_5(%arg0: i32) -> (i32, i32) {
    %c0_i32 = arith.constant 0 : i32
    %c0_i32_0 = arith.constant 0 : i32
    return %arg0, %c0_i32 : i32, i32
  }
}

</mosaic_0001>

<bundles_post_ra>
// kernel: cnn_forward.1
= control target key start
LH: loop header
LB: loop body
LE: loop exit
PB: predicated region body
PF: predicated region fallthrough
CT: control target
= control target key end

     0   :  { %vm29_vm0 = vcmask 1041408   ;;  %v358_v0 = vmov 0.0   ;;  %vm359_vm1 = vmmov 0   ;;  %vm25_vm2 = vcmask 80896   ;;  %s489_s1 = inlined_call_operand.vmem [shape: f32[10,128], index: 1, kind: input, shape index: {}]   ;;  %s490_s0 = inlined_call_operand.vmem [shape: f32[8,10], index: 0, kind: input, shape index: {}]   ;;  %s491_s3 = inlined_call_operand.vmem [shape: f32[128,1], index: 3, kind: input, shape index: {}]   ;;  %s492_s2 = inlined_call_operand.vmem [shape: f32[10,1], index: 2, kind: input, shape index: {}]   ;;  %s493_s4 = inlined_call_operand.<no memory space> [shape: f32[1,1], index: 4, kind: input, shape index: {}]   ;;  %s494_s5 = inlined_call_operand.vmem [shape: f32[8,1], index: 5, kind: output, shape index: {}]  }
   0x1   :  { %307 = vmatprep.subr.mxu1 %v358_v0  ;;  %v24_v1 = vld [vmem:[%s489_s1 + $0x8] sm:$0x3]  ;;  %v23_v2 = vld [vmem:[%s489_s1] sm:$0xff]  ;;  %311 = vmatprep.mubr.msk.f32.mxu1 %vm359_vm1, %v358_v0  ;;  %v194_v4 = vld [vmem:[%s491_s3 + $0x78] sm:$0xff]  ;;  %v10_v22 = vstv %s493_s4  ;;  %vm273_vm3 = vcmask 7168  }
   0x2   :  { %308 = vmatpush3.msk.msra.mxu1 %vm29_vm0, %v24_v1  ;;  %v22_v3 = vld [vmem:[%s490_s0] sm:$0xff]  ;;  %321 = vmatprep.subr.mxu0 %v358_v0  ;;  %v193_v5 = vld [vmem:[%s491_s3 + $0x70] sm:$0xff]  ;;  %v192_v6 = vld [vmem:[%s491_s3 + $0x68] sm:$0xff]  ;;  %11 = vst [vmem:[#allocation2] sm:$0x1] %v10_v22 }
   0x3   :  { %309 = vmatprep.subr.mxu1 %v358_v0  ;;  %322 = vmatpush3.msra.mxu0 %v194_v4  ;;  %v191_v7 = vld [vmem:[%s491_s3 + $0x60] sm:$0xff]  ;;  %v104_v8 = vld [vmem:[%s492_s2 + $0x8] sm:$0x3]  ;;  %v190_v9 = vld [vmem:[%s491_s3 + $0x58] sm:$0xff] }
   0x4   :  { %310 = vmatpush3.msra.mxu1 %v23_v2  ;;  %323 = vmatprep.subr.mxu0 %v358_v0  ;;  %v189_v10 = vld [vmem:[%s491_s3 + $0x50] sm:$0xff]  ;;  %v188_v11 = vld [vmem:[%s491_s3 + $0x48] sm:$0xff]  ;;  %v187_v12 = vld [vmem:[%s491_s3 + $0x40] sm:$0xff] }
   0x5   :  { %312 = vmatmul.mubr.msk.f32.vlgmr.msra.gmra.mxu1 %vm25_vm2, %v22_v3  ;;  %324 = vmatpush3.msra.mxu0 %v193_v5  ;;  %v186_v13 = vld [vmem:[%s491_s3 + $0x38] sm:$0xff]  ;;  %v185_v14 = vld [vmem:[%s491_s3 + $0x30] sm:$0xff]  ;;  %v184_v15 = vld [vmem:[%s491_s3 + $0x28] sm:$0xff] }
   0x6   :  { %325 = vmatprep.subr.mxu0 %v358_v0  ;;  %314 = vmatprep.subr.mxu1 %v358_v0  ;;  %v183_v16 = vld [vmem:[%s491_s3 + $0x20] sm:$0xff]  ;;  %v182_v17 = vld [vmem:[%s491_s3 + $0x18] sm:$0xff]  ;;  %v181_v18 = vld [vmem:[%s491_s3 + $0x10] sm:$0xff] }
   0x7   :  { %326 = vmatpush3.msra.mxu0 %v192_v6  ;;  %315 = vmatpush3.msk.msra.mxu1 %vm29_vm0, %v104_v8  ;;  %v103_v19 = vld [vmem:[%s492_s2] sm:$0xff]  ;;  %v180_v20 = vld [vmem:[%s491_s3 + $0x8] sm:$0xff] }
   0x8   :  { %327 = vmatprep.subr.mxu0 %v358_v0  ;;  %316 = vmatprep.subr.mxu1 %v358_v0  ;;  %v179_v21 = vld [vmem:[%s491_s3] sm:$0xff] }
   0x9   :  { %328 = vmatpush3.msra.mxu0 %v191_v7  ;;  %318 = vmatprep.mubr.msk.f32.mxu1 %vm359_vm1, %v358_v0  ;;  %v283_v29 = vld [vmem:[#allocation2] ss:$0 sm:$0xff] }
   0xa   :  { %329 = vmatprep.subr.mxu0 %v358_v0  ;;  %353 = vmatprep.mubr.msk.f32.mxu0 %vm359_vm1, %v358_v0 }
   0xb   :  { %330 = vmatpush3.msra.mxu0 %v190_v9  ;;  %317 = vmatpush3.msra.mxu1 %v103_v19 }
   0xc   :  { %331 = vmatprep.subr.mxu0 %v358_v0  ;;  %319 = vmatmul.mubr.msk.f32.vlgmr.msra.gmra.mxu1 %vm25_vm2, %v22_v3 }
   0xd   :  { %332 = vmatpush3.msra.mxu0 %v189_v10 }
   0xe   :  { %333 = vmatprep.subr.mxu0 %v358_v0 }
   0xf   :  { %334 = vmatpush3.msra.mxu0 %v188_v11 }
  0x10   :  { %335 = vmatprep.subr.mxu0 %v358_v0 }
  0x11   :  { %336 = vmatpush3.msra.mxu0 %v187_v12 }
  0x12   :  { %337 = vmatprep.subr.mxu0 %v358_v0 }
  0x13   :  { %338 = vmatpush3.msra.mxu0 %v186_v13 }
  0x14   :  { %339 = vmatprep.subr.mxu0 %v358_v0 }
  0x15   :  { %340 = vmatpush3.msra.mxu0 %v185_v14 }
  0x16   :  { %341 = vmatprep.subr.mxu0 %v358_v0 }
  0x17   :  { %342 = vmatpush3.msra.mxu0 %v184_v15 }
  0x18   :  { %343 = vmatprep.subr.mxu0 %v358_v0 }
  0x19   :  { %344 = vmatpush3.msra.mxu0 %v183_v16 }
  0x1a   :  { %345 = vmatprep.subr.mxu0 %v358_v0 }
  0x1b   :  { %346 = vmatpush3.msra.mxu0 %v182_v17 }
  0x1c   :  { %347 = vmatprep.subr.mxu0 %v358_v0 }
  0x1d   :  { %348 = vmatpush3.msra.mxu0 %v181_v18 }
  0x1e   :  { %349 = vmatprep.subr.mxu0 %v358_v0 }
  0x1f   :  { %350 = vmatpush3.msra.mxu0 %v180_v20 }
  0x20   :  { %351 = vmatprep.subr.mxu0 %v358_v0 }
  0x21   :  { %352 = vmatpush3.msra.mxu0 %v179_v21 }
  0xc5   :  { %v99_v23 = vpop.f32.mrf.mxu1 }
  0xc6   :  { %v178_v24 = vmax.f32 %v99_v23, 0.0 }
  0xc7   :  { %v313_v25 = vpop.f32.mrf.mxu1 }
  0xc8   :  { %354 = vmatmul.mubr.f32.vlgmr.msra.gmra.mxu0 %v178_v24 }
  0xcc   :  { %v174_v26 = vpop.f32.mrf.mxu1 }
  0xce   :  { %v320_v27 = vpop.f32.mrf.mxu1 }
 0x188   :  { %v261_v28 = vpop.f32.mrf.mxu0 }
 0x189   :  { %v262_v30 = vadd.f32 %v261_v28, %v174_v26 }
 0x18a   :  { %v355_v31 = vpop.f32.mrf.mxu0 }
 0x18b   :  { %v272_v32 = vadd.f32 %v283_v29, %v262_v30 }
 0x18d   :  { %274 = vst.msk [vmem:[%s494_s5] sm:$0xff] %vm273_vm3, %v272_v32 }

</bundles_post_ra>
